<compile_context>
chip_gen: v5e
topology: v5e:2x2
jax: 0.10.0
libtpu: 0.0.40
codegen_flags: <defaults>
</compile_context>

<pallas_src>
import functools
import math

import jax
import jax.numpy as jnp
from jax.experimental import pallas as pl
from jax.experimental.pallas import tpu as pltpu


_TARGET_TILE_BYTES = 2 << 20  # ~2 MiB per tile per side per grid step


def _largest_divisor_leq(n, cap):
    """Largest divisor of n that is <= cap (at least 1). O(sqrt(n))."""
    cap = min(n, max(1, cap))
    best = 1
    d = 1
    while d * d <= n:
        if n % d == 0:
            lo, hi = d, n // d
            if lo <= cap and lo > best:
                best = lo
            if hi <= cap and hi > best:
                best = hi
        d += 1
    return best


def _vmem_capacity_bytes():
    """Physical VMEM of the local chip; conservative fallback if unavailable."""
    try:
        return int(pltpu.get_tpu_info().vmem_capacity_bytes)
    except Exception:
        return 64 << 20  # v7x physical (the smallest across generations)


def _transpose_tile_kernel(x_ref, o_ref):
    # x_ref: (b_tile, a, c_tile)  ->  o_ref: (b_tile, c_tile, a)
    # Pure data movement: one XLU minor-dim transpose per merged batch element,
    # whole tile resident in VMEM.  No MXU work, no pads, no per-tap loops.
    o_ref[...] = jnp.swapaxes(x_ref[...], -1, -2)


def _batched_transpose(x):
    """(batch, a, c) -> (batch, c, a); all HBM traffic inside one pallas_call."""
    batch, a, c = x.shape
    itemsize = jnp.dtype(x.dtype).itemsize

    # ---- tile selection --------------------------------------------------
    # c-tile: a multiple of 128 lanes (or the full extent when c % 128 != 0,
    # as required by the (8,128) BlockSpec rule), sized near the byte target.
    if c % 128 == 0:
        cap_units = max(1, _TARGET_TILE_BYTES // max(1, a * itemsize * 128))
        c_tile = 128 * _largest_divisor_leq(c // 128, cap_units)
    else:
        c_tile = c
    # b-tile: merge batch elements until one step moves ~_TARGET_TILE_BYTES so
    # tiny per-batch transposes are not dominated by ~0.35us/step overhead and
    # the (b_tile, c, a) output block is a dense, contiguous HBM writeback.
    per_elem = a * c_tile * itemsize
    b_tile = _largest_divisor_leq(
        batch, max(1, _TARGET_TILE_BYTES // max(1, per_elem)))

    # Explicit scoped-VMEM budget: in+out tiles, double-buffered, + headroom,
    # clamped to the chip's physical capacity (64 MiB on v7x, 128 on v5e/v6e).
    tile_bytes = b_tile * per_elem
    vmem_limit = int(min(max(4 * tile_bytes + (2 << 20), 32 << 20),
                         int(0.9 * _vmem_capacity_bytes())))

    grid = (batch // b_tile, c // c_tile)
    return pl.pallas_call(
        _transpose_tile_kernel,
        out_shape=jax.ShapeDtypeStruct((batch, c, a), x.dtype),
        grid=grid,
        in_specs=[pl.BlockSpec((b_tile, a, c_tile), lambda b, j: (b, 0, j))],
        out_specs=pl.BlockSpec((b_tile, c_tile, a), lambda b, j: (b, j, 0)),
        compiler_params=pltpu.CompilerParams(
            dimension_semantics=("parallel", "parallel"),
            vmem_limit_bytes=vmem_limit),
        cost_estimate=pl.CostEstimate(flops=0, transcendentals=0,
                                      bytes_accessed=2 * x.size * itemsize),
    )(x)


def _merge_adjacent(shape, perm):
    """Merge input axes that remain adjacent & in-order under `perm`.

    Returns (gshape, gperm), gshape in input order, such that
        jnp.transpose(x, perm)
          == jnp.transpose(x.reshape(gshape), gperm).reshape(out_shape)
    """
    groups = [[perm[0]]]                      # groups listed in OUTPUT order
    for p in perm[1:]:
        if p == groups[-1][-1] + 1:
            groups[-1].append(p)
        else:
            groups.append([p])
    order = sorted(range(len(groups)), key=lambda g: groups[g][0])  # input order
    gshape = tuple(math.prod(shape[a] for a in groups[g]) for g in order)
    pos = {g: j for j, g in enumerate(order)}  # output-group -> input-order idx
    gperm = tuple(pos[i] for i in range(len(groups)))
    return gshape, gperm


def pallas_permute(x, perm):
    """jnp.transpose(x, perm), with all data movement inside Pallas kernels."""
    nd = x.ndim
    perm = tuple(int(p) % nd for p in perm) if nd else tuple(perm)
    if sorted(perm) != list(range(nd)):
        raise ValueError(f"invalid permutation {perm} for rank-{nd} input")
    if nd == 0:
        return x
    out_shape = tuple(x.shape[p] for p in perm)

    gshape, gperm = _merge_adjacent(x.shape, perm)
    k = len(gshape)
    if k == 1:
        # Identity permutation: torch.permute returns a view; return the input.
        return x

    # Decompose the grouped permutation into a short chain of suffix
    # block-rotations.  Each pass is one tiled batched (batch, a, c)->(batch,
    # c, a) Pallas transpose; trailing-swap permutes (NCHW<->NHWC, (0,2,1),
    # (1,0), ...) take exactly one pass.  Greedy: extend the matched prefix by
    # one group per pass, so at most k-1 passes for k merged groups.
    current = list(range(k))          # grouped axes, in their current layout
    target = list(gperm)
    y = x.reshape(gshape)             # free (row-major compatible)
    cur_shape = list(gshape)
    while current != target:
        m = 0
        while current[m] == target[m]:
            m += 1
        i = current.index(target[m])  # i > m by construction
        batch = math.prod(cur_shape[:m])
        a_dim = math.prod(cur_shape[m:i])
        c_dim = math.prod(cur_shape[i:])
        y = _batched_transpose(y.reshape(batch, a_dim, c_dim))
        current = current[:m] + current[i:] + current[m:i]
        cur_shape = [gshape[g] for g in current]
        y = y.reshape(cur_shape)      # free
    return y.reshape(out_shape)       # free


class Permute:
    """Pallas port of the PyTorch module: forward(x) = torch.permute(x, self.shape)."""

    def __init__(self, shape):
        self.shape = tuple(shape)
        self._fn = jax.jit(functools.partial(pallas_permute, perm=self.shape))

    def __call__(self, x):
        return self._fn(x)


if __name__ == "__main__":
    key = jax.random.PRNGKey(0)
    N, C, H, W = 2, 4, 16, 16
    x = jax.random.normal(key, (N, C, H, W), dtype=jnp.float32)

    # NCHW -> NHWC (the canonical use of Permute in the surgery pass).
    perm1 = (0, 2, 3, 1)
    y1 = jax.block_until_ready(Permute(perm1)(x))
    ref1 = jnp.transpose(x, perm1)
    assert y1.shape == ref1.shape
    assert bool(jnp.array_equal(y1, ref1))

    # NHWC-style -> NCHW-style permutation on the same input.
    perm2 = (0, 3, 1, 2)
    y2 = jax.block_until_ready(Permute(perm2)(x))
    assert bool(jnp.array_equal(y2, jnp.transpose(x, perm2)))

    # Round trip: NHWC result back to NCHW must recover x exactly.
    y3 = jax.block_until_ready(Permute((0, 3, 1, 2))(y1))
    assert bool(jnp.array_equal(y3, x))

    # Identity permutation (pure view, like torch.permute).
    y4 = jax.block_until_ready(Permute((0, 1, 2, 3))(x))
    assert bool(jnp.array_equal(y4, x))

    # General (non-trailing-swap) permutation: full reversal of a rank-3 array.
    # Exercises the multi-pass decomposition that replaced the old whole-array
    # VMEM fallback (two passes of the same tiled transpose kernel).
    key2 = jax.random.PRNGKey(1)
    x3 = jax.random.normal(key2, (4, 16, 32), dtype=jnp.float32)
    perm5 = (2, 1, 0)
    y5 = jax.block_until_ready(Permute(perm5)(x3))
    assert bool(jnp.array_equal(y5, jnp.transpose(x3, perm5)))

    print("KERNEL_OK")
</pallas_src>

<mosaic_0001>
module attributes {stable_mosaic.version = 11 : i64} {
  func.func @_transpose_tile_kernel(%arg0: i32, %arg1: i32, %arg2: memref<2x4x256xf32, #tpu.memory_space<vmem>>, %arg3: memref<2x256x4xf32, #tpu.memory_space<vmem>>) attributes {dimension_semantics = [#tpu.dimension_semantics<parallel>, #tpu.dimension_semantics<parallel>], iteration_bounds = array<i64: 1, 1>, scalar_prefetch = 0 : i64, scratch_operands = 0 : i64, tpu.core_type = #tpu.core_type<tc>, window_params = [{transform_indices = @transform_0, window_bounds = array<i64: 2, 4, 256>}, {transform_indices = @transform_1, window_bounds = array<i64: 2, 256, 4>}]} {
    %c0 = arith.constant 0 : index
    %c0_0 = arith.constant 0 : index
    %c0_1 = arith.constant 0 : index
    %0 = vector.load %arg2[%c0, %c0_0, %c0_1] : memref<2x4x256xf32, #tpu.memory_space<vmem>>, vector<2x4x256xf32>
    %1 = tpu.transpose %0, [0, 2, 1] : vector<2x4x256xf32> -> vector<2x256x4xf32>
    %c0_2 = arith.constant 0 : index
    %c0_3 = arith.constant 0 : index
    %c0_4 = arith.constant 0 : index
    %2 = vector.load %arg3[%c0_2, %c0_3, %c0_4] : memref<2x256x4xf32, #tpu.memory_space<vmem>>, vector<2x256x4xf32>
    tpu.vector_store %arg3[%c0_2, %c0_3, %c0_4], %1 {strides = array<i32>} : memref<2x256x4xf32, #tpu.memory_space<vmem>>, vector<2x256x4xf32>,
    return
  }
  func.func @transform_0(%arg0: i32, %arg1: i32) -> (i32, i32, i32) {
    %c0_i32 = arith.constant 0 : i32
    %c0_i32_0 = arith.constant 0 : i32
    return %arg0, %c0_i32, %arg1 : i32, i32, i32
  }
  func.func @transform_1(%arg0: i32, %arg1: i32) -> (i32, i32, i32) {
    %c0_i32 = arith.constant 0 : i32
    %c0_i32_0 = arith.constant 0 : i32
    return %arg0, %arg1, %c0_i32 : i32, i32, i32
  }
}

</mosaic_0001>

<bundles_post_ra>
// kernel: pallas_permute.1
= control target key start
LH: loop header
LB: loop body
LE: loop exit
PB: predicated region body
PF: predicated region fallthrough
CT: control target
= control target key end

     0   :  { %vm151_vm0 = vcmask 31744   ;;  %s493_s0 = inlined_call_operand.vmem [shape: f32[2,4,256], index: 0, kind: input, shape index: {}]   ;;  %s494_s1 = inlined_call_operand.vmem [shape: f32[2,256,4], index: 1, kind: output, shape index: {}]  }
   0x1   :  { %v9_v0 = vld [vmem:[%s493_s0 + $0x8] sm:$0xff]  ;;  %v8_v1 = vld [vmem:[%s493_s0] sm:$0xff] }
   0x2   :  { %16 = vst [vmem:[#allocation1 + $0x10] ss:$2 sm:$0xff] %v9_v0 }
   0x3   :  { %12 = vst [vmem:[#allocation1] ss:$2 sm:$0xff] %v8_v1 }
   0x9   :  { %v17_v2 = vld.sshfl [vmem:[#allocation1 + $0x10] sm:$0xff pattern:$0x75316420]  ;;  %v18_v4 = vld.sshfl [vmem:[#allocation1 + $0x18] sm:$0xff pattern:$0x75316420] }
   0xa   :  { %87 = vxpose.xlu1.b32.start.end [1/1] (short) %v17_v2, 128  ;;  %v13_v3 = vld.sshfl [vmem:[#allocation1] sm:$0xff pattern:$0x75316420]  ;;  %v14_v5 = vld.sshfl [vmem:[#allocation1 + $0x8] sm:$0xff pattern:$0x75316420] }
   0xb   :  { %23 = vxpose.xlu0.b32.start.end [1/1] (short) %v13_v3, 128 }
  0x8a   :  { %119 = vxpose.xlu1.b32.start.end [1/1] (short) %v18_v4, 128 }
  0x8b   :  { %55 = vxpose.xlu0.b32.start.end [1/1] (short) %v14_v5, 128 }
  0xae   :  { %v103_v6 = vpop.trf.xlu1 }
  0xaf   :  { %184 = vst.msk [vmem:[%s494_s1 + $0x100] sm:$0xff] %vm151_vm0, %v103_v6  ;;  %v39_v7 = vpop.trf.xlu0 }
  0xb0   :  { %152 = vst.msk [vmem:[%s494_s1] sm:$0xff] %vm151_vm0, %v39_v7 }
  0xb6   :  { %v104_v8 = vpop.trf.xlu1 }
  0xb7   :  { %185 = vst.msk [vmem:[%s494_s1 + $0x108] sm:$0xff] %vm151_vm0, %v104_v8  ;;  %v40_v9 = vpop.trf.xlu0 }
  0xb8   :  { %153 = vst.msk [vmem:[%s494_s1 + $0x8] sm:$0xff] %vm151_vm0, %v40_v9 }
  0xbe   :  { %v105_v10 = vpop.trf.xlu1 }
  0xbf   :  { %186 = vst.msk [vmem:[%s494_s1 + $0x110] sm:$0xff] %vm151_vm0, %v105_v10  ;;  %v41_v11 = vpop.trf.xlu0 }
  0xc0   :  { %154 = vst.msk [vmem:[%s494_s1 + $0x10] sm:$0xff] %vm151_vm0, %v41_v11 }
  0xc6   :  { %v106_v12 = vpop.trf.xlu1 }
  0xc7   :  { %187 = vst.msk [vmem:[%s494_s1 + $0x118] sm:$0xff] %vm151_vm0, %v106_v12  ;;  %v42_v13 = vpop.trf.xlu0 }
  0xc8   :  { %155 = vst.msk [vmem:[%s494_s1 + $0x18] sm:$0xff] %vm151_vm0, %v42_v13 }
  0xce   :  { %v107_v14 = vpop.trf.xlu1 }
  0xcf   :  { %188 = vst.msk [vmem:[%s494_s1 + $0x120] sm:$0xff] %vm151_vm0, %v107_v14  ;;  %v43_v15 = vpop.trf.xlu0 }
  0xd0   :  { %156 = vst.msk [vmem:[%s494_s1 + $0x20] sm:$0xff] %vm151_vm0, %v43_v15 }
  0xd6   :  { %v108_v16 = vpop.trf.xlu1 }
  0xd7   :  { %189 = vst.msk [vmem:[%s494_s1 + $0x128] sm:$0xff] %vm151_vm0, %v108_v16  ;;  %v44_v17 = vpop.trf.xlu0 }
  0xd8   :  { %157 = vst.msk [vmem:[%s494_s1 + $0x28] sm:$0xff] %vm151_vm0, %v44_v17 }
  0xde   :  { %v109_v18 = vpop.trf.xlu1 }
  0xdf   :  { %190 = vst.msk [vmem:[%s494_s1 + $0x130] sm:$0xff] %vm151_vm0, %v109_v18  ;;  %v45_v19 = vpop.trf.xlu0 }
  0xe0   :  { %158 = vst.msk [vmem:[%s494_s1 + $0x30] sm:$0xff] %vm151_vm0, %v45_v19 }
  0xe6   :  { %v110_v20 = vpop.trf.xlu1 }
  0xe7   :  { %191 = vst.msk [vmem:[%s494_s1 + $0x138] sm:$0xff] %vm151_vm0, %v110_v20  ;;  %v46_v21 = vpop.trf.xlu0 }
  0xe8   :  { %159 = vst.msk [vmem:[%s494_s1 + $0x38] sm:$0xff] %vm151_vm0, %v46_v21 }
  0xee   :  { %v111_v22 = vpop.trf.xlu1 }
  0xef   :  { %192 = vst.msk [vmem:[%s494_s1 + $0x140] sm:$0xff] %vm151_vm0, %v111_v22  ;;  %v47_v23 = vpop.trf.xlu0 }
  0xf0   :  { %160 = vst.msk [vmem:[%s494_s1 + $0x40] sm:$0xff] %vm151_vm0, %v47_v23 }
  0xf6   :  { %v112_v24 = vpop.trf.xlu1 }
  0xf7   :  { %193 = vst.msk [vmem:[%s494_s1 + $0x148] sm:$0xff] %vm151_vm0, %v112_v24  ;;  %v48_v25 = vpop.trf.xlu0 }
  0xf8   :  { %161 = vst.msk [vmem:[%s494_s1 + $0x48] sm:$0xff] %vm151_vm0, %v48_v25 }
  0xfe   :  { %v113_v26 = vpop.trf.xlu1 }
  0xff   :  { %194 = vst.msk [vmem:[%s494_s1 + $0x150] sm:$0xff] %vm151_vm0, %v113_v26  ;;  %v49_v27 = vpop.trf.xlu0 }
 0x100   :  { %162 = vst.msk [vmem:[%s494_s1 + $0x50] sm:$0xff] %vm151_vm0, %v49_v27 }
 0x106   :  { %v114_v28 = vpop.trf.xlu1 }
 0x107   :  { %195 = vst.msk [vmem:[%s494_s1 + $0x158] sm:$0xff] %vm151_vm0, %v114_v28  ;;  %v50_v29 = vpop.trf.xlu0 }
 0x108   :  { %163 = vst.msk [vmem:[%s494_s1 + $0x58] sm:$0xff] %vm151_vm0, %v50_v29 }
 0x10e   :  { %v115_v30 = vpop.trf.xlu1 }
 0x10f   :  { %196 = vst.msk [vmem:[%s494_s1 + $0x160] sm:$0xff] %vm151_vm0, %v115_v30  ;;  %v51_v31 = vpop.trf.xlu0 }
 0x110   :  { %164 = vst.msk [vmem:[%s494_s1 + $0x60] sm:$0xff] %vm151_vm0, %v51_v31 }
 0x116   :  { %v116_v32 = vpop.trf.xlu1 }
 0x117   :  { %197 = vst.msk [vmem:[%s494_s1 + $0x168] sm:$0xff] %vm151_vm0, %v116_v32  ;;  %v52_v33 = vpop.trf.xlu0 }
 0x118   :  { %165 = vst.msk [vmem:[%s494_s1 + $0x68] sm:$0xff] %vm151_vm0, %v52_v33 }
 0x11e   :  { %v117_v34 = vpop.trf.xlu1 }
 0x11f   :  { %198 = vst.msk [vmem:[%s494_s1 + $0x170] sm:$0xff] %vm151_vm0, %v117_v34  ;;  %v53_v35 = vpop.trf.xlu0 }
 0x120   :  { %166 = vst.msk [vmem:[%s494_s1 + $0x70] sm:$0xff] %vm151_vm0, %v53_v35 }
 0x126   :  { %v118_v36 = vpop.trf.xlu1 }
 0x127   :  { %199 = vst.msk [vmem:[%s494_s1 + $0x178] sm:$0xff] %vm151_vm0, %v118_v36  ;;  %v54_v37 = vpop.trf.xlu0 }
 0x128   :  { %167 = vst.msk [vmem:[%s494_s1 + $0x78] sm:$0xff] %vm151_vm0, %v54_v37 }
 0x12e   :  { %v135_v38 = vpop.trf.xlu1 }
 0x12f   :  { %200 = vst.msk [vmem:[%s494_s1 + $0x180] sm:$0xff] %vm151_vm0, %v135_v38  ;;  %v71_v39 = vpop.trf.xlu0 }
 0x130   :  { %168 = vst.msk [vmem:[%s494_s1 + $0x80] sm:$0xff] %vm151_vm0, %v71_v39 }
 0x136   :  { %v136_v40 = vpop.trf.xlu1 }
 0x137   :  { %201 = vst.msk [vmem:[%s494_s1 + $0x188] sm:$0xff] %vm151_vm0, %v136_v40  ;;  %v72_v41 = vpop.trf.xlu0 }
 0x138   :  { %169 = vst.msk [vmem:[%s494_s1 + $0x88] sm:$0xff] %vm151_vm0, %v72_v41 }
 0x13e   :  { %v137_v42 = vpop.trf.xlu1 }
 0x13f   :  { %202 = vst.msk [vmem:[%s494_s1 + $0x190] sm:$0xff] %vm151_vm0, %v137_v42  ;;  %v73_v43 = vpop.trf.xlu0 }
 0x140   :  { %170 = vst.msk [vmem:[%s494_s1 + $0x90] sm:$0xff] %vm151_vm0, %v73_v43 }
 0x146   :  { %v138_v44 = vpop.trf.xlu1 }
 0x147   :  { %203 = vst.msk [vmem:[%s494_s1 + $0x198] sm:$0xff] %vm151_vm0, %v138_v44  ;;  %v74_v45 = vpop.trf.xlu0 }
 0x148   :  { %171 = vst.msk [vmem:[%s494_s1 + $0x98] sm:$0xff] %vm151_vm0, %v74_v45 }
 0x14e   :  { %v139_v46 = vpop.trf.xlu1 }
 0x14f   :  { %204 = vst.msk [vmem:[%s494_s1 + $0x1a0] sm:$0xff] %vm151_vm0, %v139_v46  ;;  %v75_v47 = vpop.trf.xlu0 }
 0x150   :  { %172 = vst.msk [vmem:[%s494_s1 + $0xa0] sm:$0xff] %vm151_vm0, %v75_v47 }
 0x156   :  { %v140_v48 = vpop.trf.xlu1 }
 0x157   :  { %205 = vst.msk [vmem:[%s494_s1 + $0x1a8] sm:$0xff] %vm151_vm0, %v140_v48  ;;  %v76_v49 = vpop.trf.xlu0 }
 0x158   :  { %173 = vst.msk [vmem:[%s494_s1 + $0xa8] sm:$0xff] %vm151_vm0, %v76_v49 }
 0x15e   :  { %v141_v50 = vpop.trf.xlu1 }
 0x15f   :  { %206 = vst.msk [vmem:[%s494_s1 + $0x1b0] sm:$0xff] %vm151_vm0, %v141_v50  ;;  %v77_v51 = vpop.trf.xlu0 }
 0x160   :  { %174 = vst.msk [vmem:[%s494_s1 + $0xb0] sm:$0xff] %vm151_vm0, %v77_v51 }
 0x166   :  { %v142_v52 = vpop.trf.xlu1 }
 0x167   :  { %207 = vst.msk [vmem:[%s494_s1 + $0x1b8] sm:$0xff] %vm151_vm0, %v142_v52  ;;  %v78_v53 = vpop.trf.xlu0 }
 0x168   :  { %175 = vst.msk [vmem:[%s494_s1 + $0xb8] sm:$0xff] %vm151_vm0, %v78_v53 }
 0x16e   :  { %v143_v54 = vpop.trf.xlu1 }
 0x16f   :  { %208 = vst.msk [vmem:[%s494_s1 + $0x1c0] sm:$0xff] %vm151_vm0, %v143_v54  ;;  %v79_v55 = vpop.trf.xlu0 }
 0x170   :  { %176 = vst.msk [vmem:[%s494_s1 + $0xc0] sm:$0xff] %vm151_vm0, %v79_v55 }
 0x176   :  { %v144_v56 = vpop.trf.xlu1 }
 0x177   :  { %209 = vst.msk [vmem:[%s494_s1 + $0x1c8] sm:$0xff] %vm151_vm0, %v144_v56  ;;  %v80_v57 = vpop.trf.xlu0 }
 0x178   :  { %177 = vst.msk [vmem:[%s494_s1 + $0xc8] sm:$0xff] %vm151_vm0, %v80_v57 }
 0x17e   :  { %v145_v58 = vpop.trf.xlu1 }
 0x17f   :  { %210 = vst.msk [vmem:[%s494_s1 + $0x1d0] sm:$0xff] %vm151_vm0, %v145_v58  ;;  %v81_v59 = vpop.trf.xlu0 }
 0x180   :  { %178 = vst.msk [vmem:[%s494_s1 + $0xd0] sm:$0xff] %vm151_vm0, %v81_v59 }
 0x186   :  { %v146_v60 = vpop.trf.xlu1 }
 0x187   :  { %211 = vst.msk [vmem:[%s494_s1 + $0x1d8] sm:$0xff] %vm151_vm0, %v146_v60  ;;  %v82_v61 = vpop.trf.xlu0 }
 0x188   :  { %179 = vst.msk [vmem:[%s494_s1 + $0xd8] sm:$0xff] %vm151_vm0, %v82_v61 }
 0x18e   :  { %v147_v62 = vpop.trf.xlu1 }
 0x18f   :  { %212 = vst.msk [vmem:[%s494_s1 + $0x1e0] sm:$0xff] %vm151_vm0, %v147_v62  ;;  %v83_v63 = vpop.trf.xlu0 }
 0x190   :  { %180 = vst.msk [vmem:[%s494_s1 + $0xe0] sm:$0xff] %vm151_vm0, %v83_v63 }
 0x196   :  { %v148_v0 = vpop.trf.xlu1 }
 0x197   :  { %213 = vst.msk [vmem:[%s494_s1 + $0x1e8] sm:$0xff] %vm151_vm0, %v148_v0  ;;  %v84_v1 = vpop.trf.xlu0 }
 0x198   :  { %181 = vst.msk [vmem:[%s494_s1 + $0xe8] sm:$0xff] %vm151_vm0, %v84_v1 }
 0x19e   :  { %v149_v2 = vpop.trf.xlu1 }
 0x19f   :  { %214 = vst.msk [vmem:[%s494_s1 + $0x1f0] sm:$0xff] %vm151_vm0, %v149_v2  ;;  %v85_v3 = vpop.trf.xlu0 }
 0x1a0   :  { %182 = vst.msk [vmem:[%s494_s1 + $0xf0] sm:$0xff] %vm151_vm0, %v85_v3 }
 0x1a6   :  { %v150_v4 = vpop.trf.xlu1 }
 0x1a7   :  { %215 = vst.msk [vmem:[%s494_s1 + $0x1f8] sm:$0xff] %vm151_vm0, %v150_v4  ;;  %v86_v5 = vpop.trf.xlu0 }
 0x1a8   :  { %183 = vst.msk [vmem:[%s494_s1 + $0xf8] sm:$0xff] %vm151_vm0, %v86_v5 }

</bundles_post_ra>
